<compile_context>
chip_gen: v7x
topology: tpu7x:2x2x1
jax: 0.10.0
libtpu: 0.0.40
codegen_flags: <defaults>
</compile_context>

<pallas_src>
import math
import functools

import jax
import jax.numpy as jnp
from jax.experimental import pallas as pl
from jax.experimental.pallas import tpu as pltpu


def _cross_attn_kernel(q_ref, kv_ref, bias_ref,
                       wq_ref, wkv_ref,
                       bq_ref, bkv_ref,
                       wo_ref, bo_ref,
                       g_ref, be_ref,
                       o_ref,
                       *, num_heads, head_dim, eps):
    d = num_heads * head_dim

    q = q_ref[0].astype(jnp.float32)        # (bq, d) residual input (pre-LN)
    kv = kv_ref[0].astype(jnp.float32)      # (Lk, d)
    gamma = g_ref[...].astype(jnp.float32)  # (1, d)
    beta = be_ref[...].astype(jnp.float32)  # (1, d)

    def layer_norm(x):
        mu = jnp.mean(x, axis=-1, keepdims=True)
        xc = x - mu
        var = jnp.mean(xc * xc, axis=-1, keepdims=True)
        return xc * jax.lax.rsqrt(var + eps) * gamma + beta

    # VPU/EUP math in f32; only MXU operands go to bf16.
    qn = layer_norm(q).astype(jnp.bfloat16)
    kn = layer_norm(kv).astype(jnp.bfloat16)

    # Q projection — attention scale 1/sqrt(head_dim) already folded into wq/bq.
    Q = (jnp.dot(qn, wq_ref[...], preferred_element_type=jnp.float32)
         + bq_ref[...]).astype(jnp.bfloat16)                          # (bq, d)
    # Fused K|V projection: one (Lk, d) @ (d, 2d) GEMM instead of two (d, d) ones.
    KV = (jnp.dot(kn, wkv_ref[...], preferred_element_type=jnp.float32)
          + bkv_ref[...]).astype(jnp.bfloat16)                        # (Lk, 2d)

    key_bias = bias_ref[0]                  # (1, Lk) additive mask (-1e9 on padded keys)

    # Residual + out-proj bias seed the accumulator; each head accumulates
    # O_h @ Wo[h] directly — no lane-dim concatenate of heads.
    acc = q + bo_ref[...]                   # (bq, d) f32

    dims_qk = (((1,), (1,)), ((), ()))      # contract over head_dim of both operands
    for h in range(num_heads):
        lo = h * head_dim
        Qh = Q[:, lo:lo + head_dim]                # (bq, hd) bf16
        Kh = KV[:, lo:lo + head_dim]               # (Lk, hd) bf16
        Vh = KV[:, d + lo:d + lo + head_dim]       # (Lk, hd) bf16

        s = jax.lax.dot_general(Qh, Kh, dims_qk,
                                preferred_element_type=jnp.float32)   # (bq, Lk) f32
        s = s + key_bias
        m = jnp.max(s, axis=-1, keepdims=True)
        p = jnp.exp(s - m)
        # EUP reciprocal instead of a VPU divide (note: a row with every key
        # masked yields a uniform softmax here rather than NaN).
        p = p * pl.reciprocal(jnp.sum(p, axis=-1, keepdims=True), approx=True)

        oh = jnp.dot(p.astype(jnp.bfloat16), Vh,
                     preferred_element_type=jnp.float32).astype(jnp.bfloat16)  # (bq, hd)
        acc = acc + jnp.dot(oh, wo_ref[lo:lo + head_dim, :],
                            preferred_element_type=jnp.float32)

    # TODO(synk): dropout is identity here (module in eval mode); add PRNG masking for training.
    o_ref[0] = acc.astype(o_ref.dtype)


def _pick_block(n, target=256):
    """Largest divisor of n that is <= target (keeps the grid exact)."""
    if n <= target:
        return n
    for cand in range(target, 0, -1):
        if n % cand == 0:
            return cand
    return n


def cross_attention_layer(q, kv, params, key_padding_mask=None, *,
                          num_heads, eps=1e-5, block_q=None):
    """q: (B, Lq, d), kv: (B, Lk, d), key_padding_mask: (B, Lk) bool (True = ignore key)."""
    B, Lq, d = q.shape
    _, Lk, _ = kv.shape
    assert d % num_heads == 0
    head_dim = d // num_heads
    scale = 1.0 / math.sqrt(head_dim)

    if block_q is None:
        block_q = _pick_block(Lq)
    assert Lq % block_q == 0
    n_q = Lq // block_q

    W = params["in_proj_weight"].astype(jnp.float32)
    b = params["in_proj_bias"].astype(jnp.float32)
    # Pre-transpose to (in, out), fold the attention scale into the Q projection,
    # fuse K|V weights/bias, and cast MXU weights to bf16 once (host-side).
    wq = (W[0 * d:1 * d].T * scale).astype(jnp.bfloat16)
    wkv = jnp.concatenate([W[1 * d:2 * d].T, W[2 * d:3 * d].T], axis=1).astype(jnp.bfloat16)
    bq = (b[0 * d:1 * d] * scale).reshape(1, d)
    bkv = jnp.concatenate([b[1 * d:2 * d], b[2 * d:3 * d]]).reshape(1, 2 * d)
    wo = params["out_proj_weight"].astype(jnp.float32).T.astype(jnp.bfloat16)
    bo = params["out_proj_bias"].astype(jnp.float32).reshape(1, d)
    gamma = params["ln_weight"].astype(jnp.float32).reshape(1, d)
    beta = params["ln_bias"].astype(jnp.float32).reshape(1, d)

    if key_padding_mask is None:
        bias = jnp.zeros((B, 1, Lk), jnp.float32)
    else:
        bias = jnp.where(key_padding_mask, -1e9, 0.0).astype(jnp.float32).reshape(B, 1, Lk)

    q_spec = pl.BlockSpec((1, block_q, d), lambda bi, qi: (bi, qi, 0))
    kv_spec = pl.BlockSpec((1, Lk, d), lambda bi, qi: (bi, 0, 0))
    bias_spec = pl.BlockSpec((1, 1, Lk), lambda bi, qi: (bi, 0, 0))

    def const_spec(shape):
        return pl.BlockSpec(shape, lambda bi, qi: (0,) * len(shape))

    kernel = functools.partial(_cross_attn_kernel,
                               num_heads=num_heads, head_dim=head_dim, eps=eps)

    flops = 2 * B * (n_q * Lk * d * 2 * d     # fused K|V projection (recomputed per q tile)
                     + Lq * d * d             # Q projection
                     + 2 * Lq * Lk * d        # QK^T and P@V (summed over heads)
                     + Lq * d * d)            # output projection
    bytes_accessed = int(4 * (2 * q.size + n_q * B * Lk * d + bias.size)
                         + 2 * B * n_q * (wq.size + wkv.size + wo.size))
    cost = pl.CostEstimate(flops=flops,
                           transcendentals=B * num_heads * Lq * Lk,
                           bytes_accessed=bytes_accessed)

    return pl.pallas_call(
        kernel,
        out_shape=jax.ShapeDtypeStruct((B, Lq, d), q.dtype),
        grid_spec=pltpu.PrefetchScalarGridSpec(
            num_scalar_prefetch=0,
            grid=(B, n_q),
            in_specs=[q_spec, kv_spec, bias_spec,
                      const_spec((d, d)), const_spec((d, 2 * d)),
                      const_spec((1, d)), const_spec((1, 2 * d)),
                      const_spec((d, d)), const_spec((1, d)),
                      const_spec((1, d)), const_spec((1, d))],
            out_specs=q_spec,
        ),
        compiler_params=pltpu.CompilerParams(
            dimension_semantics=("parallel", "parallel"),
            vmem_limit_bytes=48 * 1024 * 1024),
        cost_estimate=cost,
    )(q, kv, bias, wq, wkv, bq, bkv, wo, bo, gamma, beta)


def _reference(q, kv, params, key_padding_mask, num_heads, eps=1e-5):
    d = q.shape[-1]
    hd = d // num_heads

    def ln(x):
        mu = jnp.mean(x, -1, keepdims=True)
        var = jnp.mean((x - mu) ** 2, -1, keepdims=True)
        return (x - mu) / jnp.sqrt(var + eps) * params["ln_weight"] + params["ln_bias"]

    qn, kn = ln(q), ln(kv)
    W = params["in_proj_weight"]
    b = params["in_proj_bias"]
    Q = qn @ W[:d].T + b[:d]
    K = kn @ W[d:2 * d].T + b[d:2 * d]
    V = kn @ W[2 * d:].T + b[2 * d:]
    B, Lq, _ = Q.shape
    Lk = K.shape[1]
    Qh = Q.reshape(B, Lq, num_heads, hd).transpose(0, 2, 1, 3)
    Kh = K.reshape(B, Lk, num_heads, hd).transpose(0, 2, 1, 3)
    Vh = V.reshape(B, Lk, num_heads, hd).transpose(0, 2, 1, 3)
    s = jnp.einsum("bhqd,bhkd->bhqk", Qh, Kh) / math.sqrt(hd)
    if key_padding_mask is not None:
        s = s + jnp.where(key_padding_mask, -1e9, 0.0)[:, None, None, :]
    p = jax.nn.softmax(s, axis=-1)
    o = jnp.einsum("bhqk,bhkd->bhqd", p, Vh).transpose(0, 2, 1, 3).reshape(B, Lq, d)
    o = o @ params["out_proj_weight"].T + params["out_proj_bias"]
    return q + o


if __name__ == "__main__":
    B, Lq, Lk, d, H = 2, 8, 16, 32, 4
    key = jax.random.PRNGKey(0)
    ks = jax.random.split(key, 8)

    q = jax.random.normal(ks[0], (B, Lq, d), jnp.float32)
    kv = jax.random.normal(ks[1], (B, Lk, d), jnp.float32)

    params = {
        "in_proj_weight": 0.1 * jax.random.normal(ks[2], (3 * d, d), jnp.float32),
        "in_proj_bias": 0.05 * jax.random.normal(ks[3], (3 * d,), jnp.float32),
        "out_proj_weight": 0.1 * jax.random.normal(ks[4], (d, d), jnp.float32),
        "out_proj_bias": 0.05 * jax.random.normal(ks[5], (d,), jnp.float32),
        "ln_weight": 1.0 + 0.05 * jax.random.normal(ks[6], (d,), jnp.float32),
        "ln_bias": 0.05 * jax.random.normal(ks[7], (d,), jnp.float32),
    }

    # key_padding_mask: True = ignore that key position (pad out last 4 keys of batch 1).
    mask = jnp.zeros((B, Lk), bool).at[1, Lk - 4:].set(True)

    out = cross_attention_layer(q, kv, params, key_padding_mask=mask, num_heads=H)
    out = jax.block_until_ready(out)

    ref = _reference(q, kv, params, mask, H)
    assert out.shape == (B, Lq, d)
    # bf16 MXU operands (f32 accumulation) -> relaxed tolerance vs. the f32 reference.
    assert jnp.allclose(out, ref, atol=3e-2, rtol=3e-2), float(jnp.max(jnp.abs(out - ref)))
    print("KERNEL_OK")
</pallas_src>

<mosaic_0001>
module attributes {stable_mosaic.version = 11 : i64} {
  func.func @_cross_attn_kernel(%arg0: i32, %arg1: i32, %arg2: memref<1x8x32xf32, #tpu.memory_space<vmem>>, %arg3: memref<1x16x32xf32, #tpu.memory_space<vmem>>, %arg4: memref<1x1x16xf32, #tpu.memory_space<vmem>>, %arg5: memref<32x32xbf16, #tpu.memory_space<vmem>>, %arg6: memref<32x64xbf16, #tpu.memory_space<vmem>>, %arg7: memref<1x32xf32, #tpu.memory_space<vmem>>, %arg8: memref<1x64xf32, #tpu.memory_space<vmem>>, %arg9: memref<32x32xbf16, #tpu.memory_space<vmem>>, %arg10: memref<1x32xf32, #tpu.memory_space<vmem>>, %arg11: memref<1x32xf32, #tpu.memory_space<vmem>>, %arg12: memref<1x32xf32, #tpu.memory_space<vmem>>, %arg13: memref<1x8x32xf32, #tpu.memory_space<vmem>>) attributes {dimension_semantics = [#tpu.dimension_semantics<parallel>, #tpu.dimension_semantics<parallel>], iteration_bounds = array<i64: 2, 1>, scalar_prefetch = 0 : i64, scratch_operands = 0 : i64, tpu.core_type = #tpu.core_type<tc>, window_params = [{transform_indices = @transform_0, window_bounds = array<i64: 1, 8, 32>}, {transform_indices = @transform_1, window_bounds = array<i64: 1, 16, 32>}, {transform_indices = @transform_2, window_bounds = array<i64: 1, 1, 16>}, {pipeline_mode = #tpu.pipeline_mode<synchronous>, transform_indices = @transform_3, window_bounds = array<i64: 32, 32>}, {pipeline_mode = #tpu.pipeline_mode<synchronous>, transform_indices = @transform_4, window_bounds = array<i64: 32, 64>}, {pipeline_mode = #tpu.pipeline_mode<synchronous>, transform_indices = @transform_5, window_bounds = array<i64: 1, 32>}, {pipeline_mode = #tpu.pipeline_mode<synchronous>, transform_indices = @transform_6, window_bounds = array<i64: 1, 64>}, {pipeline_mode = #tpu.pipeline_mode<synchronous>, transform_indices = @transform_7, window_bounds = array<i64: 32, 32>}, {pipeline_mode = #tpu.pipeline_mode<synchronous>, transform_indices = @transform_8, window_bounds = array<i64: 1, 32>}, {pipeline_mode = #tpu.pipeline_mode<synchronous>, transform_indices = @transform_9, window_bounds = array<i64: 1, 32>}, {pipeline_mode = #tpu.pipeline_mode<synchronous>, transform_indices = @transform_10, window_bounds = array<i64: 1, 32>}, {transform_indices = @transform_11, window_bounds = array<i64: 1, 8, 32>}]} {
    %c0 = arith.constant 0 : index
    %c0_0 = arith.constant 0 : index
    %c0_1 = arith.constant 0 : index
    %0 = vector.load %arg2[%c0, %c0_0, %c0_1] : memref<1x8x32xf32, #tpu.memory_space<vmem>>, vector<1x8x32xf32>
    %1 = vector.shape_cast %0 : vector<1x8x32xf32> to vector<8x32xf32>
    %c0_2 = arith.constant 0 : index
    %c0_3 = arith.constant 0 : index
    %c0_4 = arith.constant 0 : index
    %2 = vector.load %arg3[%c0_2, %c0_3, %c0_4] : memref<1x16x32xf32, #tpu.memory_space<vmem>>, vector<1x16x32xf32>
    %3 = vector.shape_cast %2 : vector<1x16x32xf32> to vector<16x32xf32>
    %c0_5 = arith.constant 0 : index
    %c0_6 = arith.constant 0 : index
    %4 = vector.load %arg11[%c0_5, %c0_6] : memref<1x32xf32, #tpu.memory_space<vmem>>, vector<1x32xf32>
    %c0_7 = arith.constant 0 : index
    %c0_8 = arith.constant 0 : index
    %5 = vector.load %arg12[%c0_7, %c0_8] : memref<1x32xf32, #tpu.memory_space<vmem>>, vector<1x32xf32>
    %cst = arith.constant dense<0.000000e+00> : vector<8xf32>
    %6 = vector.multi_reduction <add>, %1, %cst [1] : vector<8x32xf32> to vector<8xf32>
    %7 = vector.shape_cast %6 : vector<8xf32> to vector<8x1xf32>
    %cst_9 = arith.constant 3.200000e+01 : f32
    %8 = vector.broadcast %cst_9 : f32 to vector<8x1xf32>
    %9 = arith.divf %7, %8 : vector<8x1xf32>
    %10 = vector.broadcast %9 : vector<8x1xf32> to vector<8x32xf32>
    %11 = arith.subf %1, %10 : vector<8x32xf32>
    %12 = arith.mulf %11, %11 : vector<8x32xf32>
    %cst_10 = arith.constant dense<0.000000e+00> : vector<8xf32>
    %13 = vector.multi_reduction <add>, %12, %cst_10 [1] : vector<8x32xf32> to vector<8xf32>
    %14 = vector.shape_cast %13 : vector<8xf32> to vector<8x1xf32>
    %cst_11 = arith.constant 3.200000e+01 : f32
    %15 = vector.broadcast %cst_11 : f32 to vector<8x1xf32>
    %16 = arith.divf %14, %15 : vector<8x1xf32>
    %cst_12 = arith.constant 9.99999974E-6 : f32
    %17 = vector.broadcast %cst_12 : f32 to vector<8x1xf32>
    %18 = arith.addf %16, %17 : vector<8x1xf32>
    %19 = math.rsqrt %18 : vector<8x1xf32>
    %20 = vector.broadcast %19 : vector<8x1xf32> to vector<8x32xf32>
    %21 = arith.mulf %11, %20 : vector<8x32xf32>
    %22 = vector.broadcast %4 : vector<1x32xf32> to vector<8x32xf32>
    %23 = arith.mulf %21, %22 : vector<8x32xf32>
    %24 = vector.broadcast %5 : vector<1x32xf32> to vector<8x32xf32>
    %25 = arith.addf %23, %24 : vector<8x32xf32>
    %26 = arith.truncf %25 : vector<8x32xf32> to vector<8x32xbf16>
    %cst_13 = arith.constant dense<0.000000e+00> : vector<16xf32>
    %27 = vector.multi_reduction <add>, %3, %cst_13 [1] : vector<16x32xf32> to vector<16xf32>
    %28 = vector.shape_cast %27 : vector<16xf32> to vector<16x1xf32>
    %cst_14 = arith.constant 3.200000e+01 : f32
    %29 = vector.broadcast %cst_14 : f32 to vector<16x1xf32>
    %30 = arith.divf %28, %29 : vector<16x1xf32>
    %31 = vector.broadcast %30 : vector<16x1xf32> to vector<16x32xf32>
    %32 = arith.subf %3, %31 : vector<16x32xf32>
    %33 = arith.mulf %32, %32 : vector<16x32xf32>
    %cst_15 = arith.constant dense<0.000000e+00> : vector<16xf32>
    %34 = vector.multi_reduction <add>, %33, %cst_15 [1] : vector<16x32xf32> to vector<16xf32>
    %35 = vector.shape_cast %34 : vector<16xf32> to vector<16x1xf32>
    %cst_16 = arith.constant 3.200000e+01 : f32
    %36 = vector.broadcast %cst_16 : f32 to vector<16x1xf32>
    %37 = arith.divf %35, %36 : vector<16x1xf32>
    %cst_17 = arith.constant 9.99999974E-6 : f32
    %38 = vector.broadcast %cst_17 : f32 to vector<16x1xf32>
    %39 = arith.addf %37, %38 : vector<16x1xf32>
    %40 = math.rsqrt %39 : vector<16x1xf32>
    %41 = vector.broadcast %40 : vector<16x1xf32> to vector<16x32xf32>
    %42 = arith.mulf %32, %41 : vector<16x32xf32>
    %43 = vector.broadcast %4 : vector<1x32xf32> to vector<16x32xf32>
    %44 = arith.mulf %42, %43 : vector<16x32xf32>
    %45 = vector.broadcast %5 : vector<1x32xf32> to vector<16x32xf32>
    %46 = arith.addf %44, %45 : vector<16x32xf32>
    %47 = arith.truncf %46 : vector<16x32xf32> to vector<16x32xbf16>
    %c0_18 = arith.constant 0 : index
    %c0_19 = arith.constant 0 : index
    %48 = vector.load %arg5[%c0_18, %c0_19] : memref<32x32xbf16, #tpu.memory_space<vmem>>, vector<32x32xbf16>
    %cst_20 = arith.constant dense<0.000000e+00> : vector<8x32xf32>
    %49 = tpu.matmul %26, %48, %cst_20 {dimension_numbers = #tpu.dot_dimension_numbers<[1], [0], [0], [1], [0, 0, 1, 1], [], []>} : vector<8x32xbf16>, vector<32x32xbf16>, vector<8x32xf32> -> vector<8x32xf32>
    %c0_21 = arith.constant 0 : index
    %c0_22 = arith.constant 0 : index
    %50 = vector.load %arg7[%c0_21, %c0_22] : memref<1x32xf32, #tpu.memory_space<vmem>>, vector<1x32xf32>
    %51 = vector.broadcast %50 : vector<1x32xf32> to vector<8x32xf32>
    %52 = arith.addf %49, %51 : vector<8x32xf32>
    %53 = arith.truncf %52 : vector<8x32xf32> to vector<8x32xbf16>
    %c0_23 = arith.constant 0 : index
    %c0_24 = arith.constant 0 : index
    %54 = vector.load %arg6[%c0_23, %c0_24] : memref<32x64xbf16, #tpu.memory_space<vmem>>, vector<32x64xbf16>
    %cst_25 = arith.constant dense<0.000000e+00> : vector<16x64xf32>
    %55 = tpu.matmul %47, %54, %cst_25 {dimension_numbers = #tpu.dot_dimension_numbers<[1], [0], [0], [1], [0, 0, 1, 1], [], []>} : vector<16x32xbf16>, vector<32x64xbf16>, vector<16x64xf32> -> vector<16x64xf32>
    %c0_26 = arith.constant 0 : index
    %c0_27 = arith.constant 0 : index
    %56 = vector.load %arg8[%c0_26, %c0_27] : memref<1x64xf32, #tpu.memory_space<vmem>>, vector<1x64xf32>
    %57 = vector.broadcast %56 : vector<1x64xf32> to vector<16x64xf32>
    %58 = arith.addf %55, %57 : vector<16x64xf32>
    %59 = arith.truncf %58 : vector<16x64xf32> to vector<16x64xbf16>
    %c0_28 = arith.constant 0 : index
    %c0_29 = arith.constant 0 : index
    %c0_30 = arith.constant 0 : index
    %60 = vector.load %arg4[%c0_28, %c0_29, %c0_30] : memref<1x1x16xf32, #tpu.memory_space<vmem>>, vector<1x1x16xf32>
    %61 = vector.shape_cast %60 : vector<1x1x16xf32> to vector<1x16xf32>
    %c0_31 = arith.constant 0 : index
    %c0_32 = arith.constant 0 : index
    %62 = vector.load %arg10[%c0_31, %c0_32] : memref<1x32xf32, #tpu.memory_space<vmem>>, vector<1x32xf32>
    %63 = vector.broadcast %62 : vector<1x32xf32> to vector<8x32xf32>
    %64 = arith.addf %1, %63 : vector<8x32xf32>
    %65 = vector.extract_strided_slice %53 {offsets = [0, 0], sizes = [8, 8], strides = [1, 1]} : vector<8x32xbf16> to vector<8x8xbf16>
    %66 = vector.extract_strided_slice %59 {offsets = [0, 0], sizes = [16, 8], strides = [1, 1]} : vector<16x64xbf16> to vector<16x8xbf16>
    %67 = vector.extract_strided_slice %59 {offsets = [0, 32], sizes = [16, 8], strides = [1, 1]} : vector<16x64xbf16> to vector<16x8xbf16>
    %cst_33 = arith.constant dense<0.000000e+00> : vector<8x16xf32>
    %68 = tpu.matmul %65, %66, %cst_33 {dimension_numbers = #tpu.dot_dimension_numbers<[1], [1], [0], [0], [0, 0, 1, 0], [], []>} : vector<8x8xbf16>, vector<16x8xbf16>, vector<8x16xf32> -> vector<8x16xf32>
    %69 = vector.broadcast %61 : vector<1x16xf32> to vector<8x16xf32>
    %70 = arith.addf %68, %69 : vector<8x16xf32>
    %cst_34 = arith.constant dense<0xFF800000> : vector<8xf32>
    %71 = vector.multi_reduction <maximumf>, %70, %cst_34 [1] : vector<8x16xf32> to vector<8xf32>
    %72 = vector.shape_cast %71 : vector<8xf32> to vector<8x1xf32>
    %73 = vector.broadcast %72 : vector<8x1xf32> to vector<8x16xf32>
    %74 = arith.subf %70, %73 : vector<8x16xf32>
    %75 = math.exp %74 : vector<8x16xf32>
    %cst_35 = arith.constant dense<0.000000e+00> : vector<8xf32>
    %76 = vector.multi_reduction <add>, %75, %cst_35 [1] : vector<8x16xf32> to vector<8xf32>
    %77 = vector.shape_cast %76 : vector<8xf32> to vector<8x1xf32>
    %78 = tpu.reciprocal %77 {approx = true} : vector<8x1xf32> -> vector<8x1xf32>
    %79 = vector.broadcast %78 : vector<8x1xf32> to vector<8x16xf32>
    %80 = arith.mulf %75, %79 : vector<8x16xf32>
    %81 = arith.truncf %80 : vector<8x16xf32> to vector<8x16xbf16>
    %cst_36 = arith.constant dense<0.000000e+00> : vector<8x8xf32>
    %82 = tpu.matmul %81, %67, %cst_36 {dimension_numbers = #tpu.dot_dimension_numbers<[1], [0], [0], [1], [0, 0, 1, 1], [], []>} : vector<8x16xbf16>, vector<16x8xbf16>, vector<8x8xf32> -> vector<8x8xf32>
    %83 = arith.truncf %82 : vector<8x8xf32> to vector<8x8xbf16>
    %c0_37 = arith.constant 0 : index
    %c0_38 = arith.constant 0 : index
    %84 = vector.load %arg9[%c0_37, %c0_38] : memref<32x32xbf16, #tpu.memory_space<vmem>>, vector<8x32xbf16>
    %cst_39 = arith.constant dense<0.000000e+00> : vector<8x32xf32>
    %85 = tpu.matmul %83, %84, %cst_39 {dimension_numbers = #tpu.dot_dimension_numbers<[1], [0], [0], [1], [0, 0, 1, 1], [], []>} : vector<8x8xbf16>, vector<8x32xbf16>, vector<8x32xf32> -> vector<8x32xf32>
    %86 = arith.addf %64, %85 : vector<8x32xf32>
    %87 = vector.extract_strided_slice %53 {offsets = [0, 8], sizes = [8, 8], strides = [1, 1]} : vector<8x32xbf16> to vector<8x8xbf16>
    %88 = vector.extract_strided_slice %59 {offsets = [0, 8], sizes = [16, 8], strides = [1, 1]} : vector<16x64xbf16> to vector<16x8xbf16>
    %89 = vector.extract_strided_slice %59 {offsets = [0, 40], sizes = [16, 8], strides = [1, 1]} : vector<16x64xbf16> to vector<16x8xbf16>
    %cst_40 = arith.constant dense<0.000000e+00> : vector<8x16xf32>
    %90 = tpu.matmul %87, %88, %cst_40 {dimension_numbers = #tpu.dot_dimension_numbers<[1], [1], [0], [0], [0, 0, 1, 0], [], []>} : vector<8x8xbf16>, vector<16x8xbf16>, vector<8x16xf32> -> vector<8x16xf32>
    %91 = vector.broadcast %61 : vector<1x16xf32> to vector<8x16xf32>
    %92 = arith.addf %90, %91 : vector<8x16xf32>
    %cst_41 = arith.constant dense<0xFF800000> : vector<8xf32>
    %93 = vector.multi_reduction <maximumf>, %92, %cst_41 [1] : vector<8x16xf32> to vector<8xf32>
    %94 = vector.shape_cast %93 : vector<8xf32> to vector<8x1xf32>
    %95 = vector.broadcast %94 : vector<8x1xf32> to vector<8x16xf32>
    %96 = arith.subf %92, %95 : vector<8x16xf32>
    %97 = math.exp %96 : vector<8x16xf32>
    %cst_42 = arith.constant dense<0.000000e+00> : vector<8xf32>
    %98 = vector.multi_reduction <add>, %97, %cst_42 [1] : vector<8x16xf32> to vector<8xf32>
    %99 = vector.shape_cast %98 : vector<8xf32> to vector<8x1xf32>
    %100 = tpu.reciprocal %99 {approx = true} : vector<8x1xf32> -> vector<8x1xf32>
    %101 = vector.broadcast %100 : vector<8x1xf32> to vector<8x16xf32>
    %102 = arith.mulf %97, %101 : vector<8x16xf32>
    %103 = arith.truncf %102 : vector<8x16xf32> to vector<8x16xbf16>
    %cst_43 = arith.constant dense<0.000000e+00> : vector<8x8xf32>
    %104 = tpu.matmul %103, %89, %cst_43 {dimension_numbers = #tpu.dot_dimension_numbers<[1], [0], [0], [1], [0, 0, 1, 1], [], []>} : vector<8x16xbf16>, vector<16x8xbf16>, vector<8x8xf32> -> vector<8x8xf32>
    %105 = arith.truncf %104 : vector<8x8xf32> to vector<8x8xbf16>
    %c8 = arith.constant 8 : index
    %c0_44 = arith.constant 0 : index
    %106 = vector.load %arg9[%c8, %c0_44] : memref<32x32xbf16, #tpu.memory_space<vmem>>, vector<8x32xbf16>
    %cst_45 = arith.constant dense<0.000000e+00> : vector<8x32xf32>
    %107 = tpu.matmul %105, %106, %cst_45 {dimension_numbers = #tpu.dot_dimension_numbers<[1], [0], [0], [1], [0, 0, 1, 1], [], []>} : vector<8x8xbf16>, vector<8x32xbf16>, vector<8x32xf32> -> vector<8x32xf32>
    %108 = arith.addf %86, %107 : vector<8x32xf32>
    %109 = vector.extract_strided_slice %53 {offsets = [0, 16], sizes = [8, 8], strides = [1, 1]} : vector<8x32xbf16> to vector<8x8xbf16>
    %110 = vector.extract_strided_slice %59 {offsets = [0, 16], sizes = [16, 8], strides = [1, 1]} : vector<16x64xbf16> to vector<16x8xbf16>
    %111 = vector.extract_strided_slice %59 {offsets = [0, 48], sizes = [16, 8], strides = [1, 1]} : vector<16x64xbf16> to vector<16x8xbf16>
    %cst_46 = arith.constant dense<0.000000e+00> : vector<8x16xf32>
    %112 = tpu.matmul %109, %110, %cst_46 {dimension_numbers = #tpu.dot_dimension_numbers<[1], [1], [0], [0], [0, 0, 1, 0], [], []>} : vector<8x8xbf16>, vector<16x8xbf16>, vector<8x16xf32> -> vector<8x16xf32>
    %113 = vector.broadcast %61 : vector<1x16xf32> to vector<8x16xf32>
    %114 = arith.addf %112, %113 : vector<8x16xf32>
    %cst_47 = arith.constant dense<0xFF800000> : vector<8xf32>
    %115 = vector.multi_reduction <maximumf>, %114, %cst_47 [1] : vector<8x16xf32> to vector<8xf32>
    %116 = vector.shape_cast %115 : vector<8xf32> to vector<8x1xf32>
    %117 = vector.broadcast %116 : vector<8x1xf32> to vector<8x16xf32>
    %118 = arith.subf %114, %117 : vector<8x16xf32>
    %119 = math.exp %118 : vector<8x16xf32>
    %cst_48 = arith.constant dense<0.000000e+00> : vector<8xf32>
    %120 = vector.multi_reduction <add>, %119, %cst_48 [1] : vector<8x16xf32> to vector<8xf32>
    %121 = vector.shape_cast %120 : vector<8xf32> to vector<8x1xf32>
    %122 = tpu.reciprocal %121 {approx = true} : vector<8x1xf32> -> vector<8x1xf32>
    %123 = vector.broadcast %122 : vector<8x1xf32> to vector<8x16xf32>
    %124 = arith.mulf %119, %123 : vector<8x16xf32>
    %125 = arith.truncf %124 : vector<8x16xf32> to vector<8x16xbf16>
    %cst_49 = arith.constant dense<0.000000e+00> : vector<8x8xf32>
    %126 = tpu.matmul %125, %111, %cst_49 {dimension_numbers = #tpu.dot_dimension_numbers<[1], [0], [0], [1], [0, 0, 1, 1], [], []>} : vector<8x16xbf16>, vector<16x8xbf16>, vector<8x8xf32> -> vector<8x8xf32>
    %127 = arith.truncf %126 : vector<8x8xf32> to vector<8x8xbf16>
    %c16 = arith.constant 16 : index
    %c0_50 = arith.constant 0 : index
    %128 = vector.load %arg9[%c16, %c0_50] : memref<32x32xbf16, #tpu.memory_space<vmem>>, vector<8x32xbf16>
    %cst_51 = arith.constant dense<0.000000e+00> : vector<8x32xf32>
    %129 = tpu.matmul %127, %128, %cst_51 {dimension_numbers = #tpu.dot_dimension_numbers<[1], [0], [0], [1], [0, 0, 1, 1], [], []>} : vector<8x8xbf16>, vector<8x32xbf16>, vector<8x32xf32> -> vector<8x32xf32>
    %130 = arith.addf %108, %129 : vector<8x32xf32>
    %131 = vector.extract_strided_slice %53 {offsets = [0, 24], sizes = [8, 8], strides = [1, 1]} : vector<8x32xbf16> to vector<8x8xbf16>
    %132 = vector.extract_strided_slice %59 {offsets = [0, 24], sizes = [16, 8], strides = [1, 1]} : vector<16x64xbf16> to vector<16x8xbf16>
    %133 = vector.extract_strided_slice %59 {offsets = [0, 56], sizes = [16, 8], strides = [1, 1]} : vector<16x64xbf16> to vector<16x8xbf16>
    %cst_52 = arith.constant dense<0.000000e+00> : vector<8x16xf32>
    %134 = tpu.matmul %131, %132, %cst_52 {dimension_numbers = #tpu.dot_dimension_numbers<[1], [1], [0], [0], [0, 0, 1, 0], [], []>} : vector<8x8xbf16>, vector<16x8xbf16>, vector<8x16xf32> -> vector<8x16xf32>
    %135 = vector.broadcast %61 : vector<1x16xf32> to vector<8x16xf32>
    %136 = arith.addf %134, %135 : vector<8x16xf32>
    %cst_53 = arith.constant dense<0xFF800000> : vector<8xf32>
    %137 = vector.multi_reduction <maximumf>, %136, %cst_53 [1] : vector<8x16xf32> to vector<8xf32>
    %138 = vector.shape_cast %137 : vector<8xf32> to vector<8x1xf32>
    %139 = vector.broadcast %138 : vector<8x1xf32> to vector<8x16xf32>
    %140 = arith.subf %136, %139 : vector<8x16xf32>
    %141 = math.exp %140 : vector<8x16xf32>
    %cst_54 = arith.constant dense<0.000000e+00> : vector<8xf32>
    %142 = vector.multi_reduction <add>, %141, %cst_54 [1] : vector<8x16xf32> to vector<8xf32>
    %143 = vector.shape_cast %142 : vector<8xf32> to vector<8x1xf32>
    %144 = tpu.reciprocal %143 {approx = true} : vector<8x1xf32> -> vector<8x1xf32>
    %145 = vector.broadcast %144 : vector<8x1xf32> to vector<8x16xf32>
    %146 = arith.mulf %141, %145 : vector<8x16xf32>
    %147 = arith.truncf %146 : vector<8x16xf32> to vector<8x16xbf16>
    %cst_55 = arith.constant dense<0.000000e+00> : vector<8x8xf32>
    %148 = tpu.matmul %147, %133, %cst_55 {dimension_numbers = #tpu.dot_dimension_numbers<[1], [0], [0], [1], [0, 0, 1, 1], [], []>} : vector<8x16xbf16>, vector<16x8xbf16>, vector<8x8xf32> -> vector<8x8xf32>
    %149 = arith.truncf %148 : vector<8x8xf32> to vector<8x8xbf16>
    %c24 = arith.constant 24 : index
    %c0_56 = arith.constant 0 : index
    %150 = vector.load %arg9[%c24, %c0_56] : memref<32x32xbf16, #tpu.memory_space<vmem>>, vector<8x32xbf16>
    %cst_57 = arith.constant dense<0.000000e+00> : vector<8x32xf32>
    %151 = tpu.matmul %149, %150, %cst_57 {dimension_numbers = #tpu.dot_dimension_numbers<[1], [0], [0], [1], [0, 0, 1, 1], [], []>} : vector<8x8xbf16>, vector<8x32xbf16>, vector<8x32xf32> -> vector<8x32xf32>
    %152 = arith.addf %130, %151 : vector<8x32xf32>
    %c0_58 = arith.constant 0 : index
    %c0_59 = arith.constant 0 : index
    %c0_60 = arith.constant 0 : index
    %153 = vector.load %arg13[%c0_58, %c0_59, %c0_60] : memref<1x8x32xf32, #tpu.memory_space<vmem>>, vector<1x8x32xf32>
    %154 = vector.shape_cast %153 : vector<1x8x32xf32> to vector<8x32xf32>
    %155 = vector.shape_cast %152 : vector<8x32xf32> to vector<1x8x32xf32>
    tpu.vector_store %arg13[%c0_58, %c0_59, %c0_60], %155 {strides = array<i32>} : memref<1x8x32xf32, #tpu.memory_space<vmem>>, vector<1x8x32xf32>,
    return
  }
  func.func @transform_0(%arg0: i32, %arg1: i32) -> (i32, i32, i32) {
    %c0_i32 = arith.constant 0 : i32
    %c0_i32_0 = arith.constant 0 : i32
    return %arg0, %arg1, %c0_i32 : i32, i32, i32
  }
  func.func @transform_1(%arg0: i32, %arg1: i32) -> (i32, i32, i32) {
    %c0_i32 = arith.constant 0 : i32
    %c0_i32_0 = arith.constant 0 : i32
    %c0_i32_1 = arith.constant 0 : i32
    return %arg0, %c0_i32, %c0_i32_0 : i32, i32, i32
  }
  func.func @transform_2(%arg0: i32, %arg1: i32) -> (i32, i32, i32) {
    %c0_i32 = arith.constant 0 : i32
    %c0_i32_0 = arith.constant 0 : i32
    %c0_i32_1 = arith.constant 0 : i32
    return %arg0, %c0_i32, %c0_i32_0 : i32, i32, i32
  }
  func.func @transform_3(%arg0: i32, %arg1: i32) -> (i32, i32) {
    %c0_i32 = arith.constant 0 : i32
    %c0_i32_0 = arith.constant 0 : i32
    %c0_i32_1 = arith.constant 0 : i32
    return %c0_i32, %c0_i32_0 : i32, i32
  }
  func.func @transform_4(%arg0: i32, %arg1: i32) -> (i32, i32) {
    %c0_i32 = arith.constant 0 : i32
    %c0_i32_0 = arith.constant 0 : i32
    %c0_i32_1 = arith.constant 0 : i32
    return %c0_i32, %c0_i32_0 : i32, i32
  }
  func.func @transform_5(%arg0: i32, %arg1: i32) -> (i32, i32) {
    %c0_i32 = arith.constant 0 : i32
    %c0_i32_0 = arith.constant 0 : i32
    %c0_i32_1 = arith.constant 0 : i32
    return %c0_i32, %c0_i32_0 : i32, i32
  }
  func.func @transform_6(%arg0: i32, %arg1: i32) -> (i32, i32) {
    %c0_i32 = arith.constant 0 : i32
    %c0_i32_0 = arith.constant 0 : i32
    %c0_i32_1 = arith.constant 0 : i32
    return %c0_i32, %c0_i32_0 : i32, i32
  }
  func.func @transform_7(%arg0: i32, %arg1: i32) -> (i32, i32) {
    %c0_i32 = arith.constant 0 : i32
    %c0_i32_0 = arith.constant 0 : i32
    %c0_i32_1 = arith.constant 0 : i32
    return %c0_i32, %c0_i32_0 : i32, i32
  }
  func.func @transform_8(%arg0: i32, %arg1: i32) -> (i32, i32) {
    %c0_i32 = arith.constant 0 : i32
    %c0_i32_0 = arith.constant 0 : i32
    %c0_i32_1 = arith.constant 0 : i32
    return %c0_i32, %c0_i32_0 : i32, i32
  }
  func.func @transform_9(%arg0: i32, %arg1: i32) -> (i32, i32) {
    %c0_i32 = arith.constant 0 : i32
    %c0_i32_0 = arith.constant 0 : i32
    %c0_i32_1 = arith.constant 0 : i32
    return %c0_i32, %c0_i32_0 : i32, i32
  }
  func.func @transform_10(%arg0: i32, %arg1: i32) -> (i32, i32) {
    %c0_i32 = arith.constant 0 : i32
    %c0_i32_0 = arith.constant 0 : i32
    %c0_i32_1 = arith.constant 0 : i32
    return %c0_i32, %c0_i32_0 : i32, i32
  }
  func.func @transform_11(%arg0: i32, %arg1: i32) -> (i32, i32, i32) {
    %c0_i32 = arith.constant 0 : i32
    %c0_i32_0 = arith.constant 0 : i32
    return %arg0, %arg1, %c0_i32 : i32, i32, i32
  }
}

</mosaic_0001>

<bundles_post_ra>
// kernel: tpu_custom_call.1
= control target key start
LH: loop header
LB: loop body
LE: loop exit
PB: predicated region body
PF: predicated region fallthrough
CT: control target
= control target key end

     0   :  { %s2533_s0 = inlined_call_operand.hbm [shape: f32[2,8,32], index: 0, kind: input, shape index: {}]   ;;  %s2534_s1 = inlined_call_operand.hbm [shape: f32[2,16,32], index: 1, kind: input, shape index: {}]   ;;  %s2535_s2 = inlined_call_operand.vmem [shape: f32[2,1,16], index: 2, kind: input, shape index: {}]   ;;  %s2536_s3 = inlined_call_operand.hbm [shape: bf16[32,32], index: 3, kind: input, shape index: {}]   ;;  %s2537_s4 = inlined_call_operand.hbm [shape: bf16[32,64], index: 4, kind: input, shape index: {}]   ;;  %s2538_s5 = inlined_call_operand.vmem [shape: f32[1,32], index: 5, kind: input, shape index: {}]   ;;  %s2539_s6 = inlined_call_operand.vmem [shape: f32[1,64], index: 6, kind: input, shape index: {}]   ;;  %s2540_s7 = inlined_call_operand.vmem [shape: bf16[32,32], index: 7, kind: input, shape index: {}]   ;;  %s2541_s8 = inlined_call_operand.vmem [shape: f32[1,32], index: 8, kind: input, shape index: {}]   ;;  %s2542_s9 = inlined_call_operand.vmem [shape: f32[1,32], index: 9, kind: input, shape index: {}]   ;;  %s2543_s10 = inlined_call_operand.vmem [shape: f32[1,32], index: 10, kind: input, shape index: {}]   ;;  %s2544_s11 = inlined_call_operand.hbm [shape: f32[2,8,32], index: 11, kind: output, shape index: {}]  }
   0x1   :  { %2553 = sst [smem:[#allocation19_spill]] %s2533_s0 }
   0x2   :  { %2554 = sst [smem:[#allocation20_spill]] %s2536_s3 }
   0x3   :  { %2555 = sst [smem:[#allocation21_spill]] %s2537_s4 }
   0x4   :  { %2556 = sst [smem:[#allocation22_spill]] %s2540_s7 }
   0x5   :  { %2557 = sst [smem:[#allocation23_spill]] %s2541_s8 }
   0x6   :  { %2558 = sst [smem:[#allocation24_spill]] %s2544_s11 }
   0x7   :  { %16 = vsyncpa [#allocation3], 0 }
   0x8   :  { %18 = vsyncpa [#allocation3 + $0x1], 0 }
   0x9   :  { %19 = vsyncpa [#allocation6], 0 }
   0xa   :  { %21 = vsyncpa [#allocation6 + $0x1], 0 }
   0xb   :  { %22 = vsyncpa [#allocation9], 0 }
   0xc   :  { %23 = vsyncpa [#allocation4], 0 }
   0xd   :  { %25 = vsyncpa [#allocation4 + $0x1], 0  ;;  %s2089_s17 = smov 0   ;;  %s2091_s18 = smov 0  }
   0xe   :  { %s2093_s19 = smov 0   ;;  %s2095_s20 = smov 0  }
   0xf   :  { %s2097_s21 = smov 0   ;;  %s2099_s22 = smov 0  }
  0x10 LB: > { %2559 = sst [smem:[#allocation16_spill]] %s1989_s17  ;;  %s2120_s23 = sadd.s32 4294967295, %s2009_s22   ;;  %s2009_s22 = sphi %s2099_s22, %s31_s22   ;;  %s2005_s21 = sphi %s2097_s21, %s2591_s21   ;;  %s2001_s20 = sphi %s2095_s20, %s2590_s20   ;;  %s1997_s19 = sphi %s2093_s19, %s2589_s19   ;;  %s1993_s18 = sphi %s2091_s18, %s2588_s18   ;;  %s1989_s17 = sphi %s2089_s17, %s2587_s17  }
  0x11   : > { %s1496_s24 = sadd.s32 4294967294, %s2009_s22   ;;  %p65_p0 = scmp.ne.s32.totalorder %s1993_s18, %s1989_s17 }
  0x12   : > { %p2547_p1 = scmp.eq.s32.totalorder %s2120_s23, 0  ;;  %p317_p3 = scmp.eq.s32.totalorder %s1496_s24, 1 }
  0x13   : > { %p1497_p5 = scmp.ge.s32.totalorder %s2009_s22, 1  ;;  %p324_p7 = scmp.lt.s32.totalorder %s2009_s22, 3 }
  0x14   : > { %p2129_p4 = por %p2547_p1, %p65_p0  ;;  %p2134_p6 = por %p317_p3, %p65_p0 }
  0x15   : > { %p2139_p8 = pnand %p1497_p5, %p324_p7  ;;  %s2011_s28 = smov [#allocation7]  }
  0x16   : > { %s2560_s25 = scalar_select %p2129_p4, 1, 0 }
  0x17   : > { %s2561_s26 = scalar_select %p2134_p6, 1, 0 }
  0x18   : > { %s336_s29 = sshll.u32 %s2011_s28, 4  ;;  %p1686_p9 = pneg %p2139_p8  ;;  %s2143_s29 = int_to_ptr.vmem [resolvable:$true] %s336_s29 }
  0x19   : > { %2562 = sst [smem:[#allocation17_spill]] %s2561_s26  ;;  %s2012_s12 = smov [#allocation8]  }
  0x1a   : > { %p2150_p11 = pnand %p1686_p9, %p2547_p1  ;;  %s349_s13 = sshll.u32 %s2012_s12, 4  ;;  %s2154_s13 = int_to_ptr.vmem [resolvable:$true] %s349_s13 }
  0x1b   : > { %s2565_s3 = sld [smem:[#allocation20_spill]] }
  0x1c   : > { %p1801_p13 = pneg %p2150_p11 }
  0x21   : > { %s1799_s16 = scalar_lea.hbm %s2565_s3, 256 }
  0x22   : > { %p1800_p12 = scmp.ne.s32.totalorder %s2565_s3, %s1799_s16  ;;  %p1806_p5 = scmp.lt.u32.totalorder %s1799_s16, %s2565_s3 }
  0x24   : > { %p1802_p0 = pnand %p1801_p13, %p1800_p12 }
  0x26   : > { %p1803_p3 = pneg %p1802_p0 }
  0x28   : > { %p1808_p7 = pnand %p1806_p5, %p1803_p3 }
  0x2a   : > { %1811 = shalt.err (!%p1808_p7)
}
  0x2b   : > { %s1812_s12 = scalar_lea.vmem %s2143_s29, 256  ;;  %p1820_p2 = scmp.lt.s32.totalorder %s2143_s29, %s2143_s29 }
  0x2c   : > { %p1813_p9 = scmp.ne.s32.totalorder %s2143_s29, %s1812_s12  ;;  %p1821_p12 = scmp.lt.s32.totalorder %s1812_s12, %s1812_s12 }
  0x2e   : > { %p1815_p10 = pnand %p1813_p9, %p1801_p13  ;;  %p1822_p0 = por %p1821_p12, %p1820_p2 }
  0x30   : > { %p1816_p1 = pneg %p1815_p10 }
  0x32   : > { %p1823_p6 = pnand %p1822_p0, %p1816_p1 }
  0x34   : > { %1826 = shalt.err (!%p1823_p6)
}
  0x35   : > { %s2013_s17 = smov 64   ;;  %s2014_s26 = smov 4  }
  0x36   : > { %1689 = dma.hbm_to_vmem [thread:$0]  (!%p2150_p11), %s2565_s3, 256, %s2143_s29, [#allocation6], %s2013_s17, %s2013_s17, %s2014_s26  }
  0x37   : > { %s2566_s4 = sld [smem:[#allocation21_spill]] }
  0x3d   : > { %s1827_s28 = scalar_lea.hbm %s2566_s4, 256 }
  0x3e   : > { %p1828_p2 = scmp.ne.s32.totalorder %s2566_s4, %s1827_s28  ;;  %p1834_p10 = scmp.lt.u32.totalorder %s1827_s28, %s2566_s4 }
  0x40   : > { %p1830_p1 = pnand %p1828_p2, %p1801_p13 }
  0x42   : > { %p1831_p6 = pneg %p1830_p1 }
  0x44   : > { %p1836_p3 = pnand %p1834_p10, %p1831_p6 }
  0x46   : > { %1839 = shalt.err (!%p1836_p3)
}
  0x47   : > { %s1840_s29 = scalar_lea.vmem %s2154_s13, 256  ;;  %p1848_p12 = scmp.lt.s32.totalorder %s2154_s13, %s2154_s13 }
  0x48   : > { %p1841_p5 = scmp.ne.s32.totalorder %s2154_s13, %s1840_s29  ;;  %p1849_p0 = scmp.lt.s32.totalorder %s1840_s29, %s1840_s29 }
  0x4a   : > { %p1843_p7 = pnand %p1841_p5, %p1801_p13  ;;  %p1850_p2 = por %p1849_p0, %p1848_p12 }
  0x4c   : > { %p1844_p9 = pneg %p1843_p7 }
  0x4e   : > { %p1851_p1 = pnand %p1850_p2, %p1844_p9 }
  0x50   : > { %1854 = shalt.err (!%p1851_p1)
}
  0x51   : > { %1692 = dma.hbm_to_vmem [thread:$0]  (!%p2150_p11), %s2566_s4, 256, %s2154_s13, [#allocation9], %s2013_s17, %s2013_s17, %s2014_s26  }
  0x52   : > { %s43_s11 = sadd.s32 1, %s2005_s21  ;;  %s52_s14 = sadd.s32 1, %s1997_s19 }
  0x53   : > { %p45_p13 = scmp.ge.s32.totalorder %s43_s11, 2  ;;  %p59_p6 = scmp.ne.s32.totalorder %s1997_s19, %s1993_s18 }
  0x54   : > { %p60_p10 = scmp.eq.s32.totalorder %s2009_s22, 0  ;;  %p1706_p3 = scmp.lt.s32.totalorder %s2009_s22, 2 }
  0x55   : > { %s2593_s11 = smov (%p45_p13, %s43_s11), 0  ;;  %p2568_p7 = scmp.eq.s32.totalorder %s2120_s23, 1 }
  0x56   : > { %2567 = sst [smem:[#allocation18_spill]] %s2593_s11  ;;  %p61_p5 = por %p60_p10, %p59_p6 }
  0x57   : > { %p2218_p9 = por %p2568_p7, %p59_p6  ;;  %s47_s15 = ssub.s32 %s2005_s21, %s2593_s11 }
  0x58   : > { %s2225_s16 = sand.u32 1, %s1997_s19   ;;  %p50_p11 = scmp.eq.s32.totalorder %s47_s15, 0 }
  0x59   : > { %s2569_s30 = scalar_select %p2218_p9, 1, 0 }
  0x5a   : > { %s1501_s13 = sshll.u32 %s2225_s16, 3  ;;  %s1502_s17 = sshll.u32 %s2005_s21, 7 }
  0x5b   : > { %s2230_s26 = scalar_select %p50_p11, %s1997_s19, %s52_s14  }
  0x5c   : > { %s2570_s0 = sld [smem:[#allocation19_spill]]  ;;  %s385_s29 = scalar_lea.vmem [#allocation2], %s1501_s13 }
  0x5d   : > { %s393_s7 = sshll.u32 %s385_s29, 4  ;;  %p2239_p12 = pnand %p1706_p3, %p61_p5  ;;  %s2243_s7 = int_to_ptr.vmem [resolvable:$true] %s393_s7 }
  0x5e   : > { %s382_s15 = scalar_lea.sflag [#allocation3], %s2225_s16 }
  0x5f   : > { %p1857_p2 = pneg %p2239_p12 }
  0x62   : > { %s2235_s12 = scalar_lea.hbm %s2570_s0, %s1502_s17  ;;  %s1860_s28 = scalar_lea.hbm %s2570_s0, 256 }
  0x63   : > { %s1855_s24 = scalar_lea.hbm %s2235_s12, 128  ;;  %p1861_p6 = scmp.lt.u32.totalorder %s2235_s12, %s2570_s0 }
  0x64   : > { %p1856_p0 = scmp.ne.s32.totalorder %s2235_s12, %s1855_s24  ;;  %p1862_p10 = scmp.lt.u32.totalorder %s1860_s28, %s1855_s24 }
  0x65   : > { %p1864_p5 = scmp.lt.u32.totalorder %s1855_s24, %s2235_s12 }
  0x66   : > { %p1858_p1 = pnand %p1857_p2, %p1856_p0  ;;  %p1863_p3 = por %p1862_p10, %p1861_p6 }
  0x68   : > { %p1859_p13 = pneg %p1858_p1  ;;  %p1865_p7 = por %p1864_p5, %p1863_p3 }
  0x6a   : > { %p1866_p11 = pnand %p1865_p7, %p1859_p13 }
  0x6c   : > { %1869 = shalt.err (!%p1866_p11)
}
  0x6d   : > { %s1870_s14 = scalar_lea.vmem %s2243_s7, 128  ;;  %s2015_s13 = smov [#allocation2]  }
  0x6e   : > { %p1871_p0 = scmp.ne.s32.totalorder %s2243_s7, %s1870_s14  ;;  %s1875_s17 = sshll.u32 %s2015_s13, 4  ;;  %s1876_s17 = int_to_ptr.vmem [resolvable:$false] %s1875_s17 }
  0x6f   : > { %s1877_s3 = scalar_lea.vmem %s1876_s17, 256  ;;  %p1878_p4 = scmp.lt.s32.totalorder %s2243_s7, %s1876_s17 }
  0x70   : > { %p1873_p1 = pnand %p1871_p0, %p1857_p2  ;;  %p1879_p6 = scmp.lt.s32.totalorder %s1877_s3, %s1870_s14 }
  0x72   : > { %p1874_p9 = pneg %p1873_p1  ;;  %p1880_p10 = por %p1879_p6, %p1878_p4 }
  0x74   : > { %p1881_p3 = pnand %p1880_p10, %p1874_p9 }
  0x76   : > { %1884 = shalt.err (!%p1881_p3)
}
  0x77   : > { %1696 = dma.hbm_to_vmem [thread:$0]  (!%p2239_p12), %s2235_s12, 128, %s2243_s7, %s382_s15  }
  0x78   : > { %s1540_s24 = sshll.u32 %s2005_s21, 8  ;;  %s2572_s28 = sshll.u32 %s2225_s16, 4 }
  0x79   : > { %s404_s29 = scalar_lea.vmem [#allocation5], %s2572_s28  ;;  %s400_s17 = sand.u32 1, %s2009_s22  }
  0x7a   : > { %s411_s13 = sshll.u32 %s404_s29, 4  ;;  %s2281_s0 = scalar_lea.hbm %s2534_s1, %s1540_s24  ;;  %s2275_s13 = int_to_ptr.vmem [resolvable:$true] %s411_s13 }
  0x7b   : > { %s2283_s4 = scalar_lea.sflag [#allocation6], %s400_s17  ;;  %s1885_s11 = scalar_lea.hbm %s2281_s0, 256 }
  0x7c   : > { %p1886_p4 = scmp.ne.s32.totalorder %s2281_s0, %s1885_s11  ;;  %s1890_s7 = scalar_lea.hbm %s2534_s1, 512 }
  0x7d   : > { %p1891_p5 = scmp.lt.u32.totalorder %s2281_s0, %s2534_s1  ;;  %p1892_p7 = scmp.lt.u32.totalorder %s1890_s7, %s1885_s11 }
  0x7e   : > { %p1888_p9 = pnand %p1886_p4, %p1857_p2  ;;  %p1894_p0 = scmp.lt.u32.totalorder %s1885_s11, %s2281_s0 }
  0x7f   : > { %p1893_p11 = por %p1892_p7, %p1891_p5 }
  0x80   : > { %p1889_p13 = pneg %p1888_p9 }
  0x81   : > { %p1895_p1 = por %p1894_p0, %p1893_p11 }
  0x83   : > { %p1896_p6 = pnand %p1895_p1, %p1889_p13 }
  0x85   : > { %1899 = shalt.err (!%p1896_p6)
}
  0x86   : > { %s1900_s24 = scalar_lea.vmem %s2275_s13, 256  ;;  %s2016_s29 = smov [#allocation5]  }
  0x87   : > { %p1901_p10 = scmp.ne.s32.totalorder %s2275_s13, %s1900_s24  ;;  %s1905_s17 = sshll.u32 %s2016_s29, 4  ;;  %s1906_s17 = int_to_ptr.vmem [resolvable:$false] %s1905_s17 }
  0x88   : > { %s1907_s14 = scalar_lea.vmem %s1906_s17, 512  ;;  %p1908_p9 = scmp.lt.s32.totalorder %s2275_s13, %s1906_s17 }
  0x89   : > { %p1903_p3 = pnand %p1901_p10, %p1857_p2  ;;  %p1909_p5 = scmp.lt.s32.totalorder %s1907_s14, %s1900_s24 }
  0x8b   : > { %p1904_p4 = pneg %p1903_p3  ;;  %p1910_p7 = por %p1909_p5, %p1908_p9 }
  0x8d   : > { %p1911_p11 = pnand %p1910_p7, %p1904_p4 }
  0x8f   : > { %1914 = shalt.err (!%p1911_p11)
}
  0x90   : > { %s2017_s11 = smov 128   ;;  %s2018_s3 = smov 8  }
  0x91   : > { %1699 = dma.hbm_to_vmem [thread:$0]  (!%p2239_p12), %s2281_s0, 256, %s2275_s13, %s2283_s4, %s2017_s11, %s2017_s11, %s2018_s3  }
  0x92   : > { %429 = sbr.rel (%p2139_p8) target bundleno = 2769 (0xad1), region = 64  ;;  %s2312_s16 = sand.u32 (!%p2139_p8), 1, %s1993_s18  }
  0x93   : > { %s1507_s12 = sshll.u32 (!%p2139_p8), %s2312_s16, 3  ;;  %s432_s7 = scalar_lea.sflag (!%p2139_p8), [#allocation3], %s2312_s16 }
  0x94   : > { %s435_s15 = scalar_lea.vmem (!%p2139_p8), [#allocation2], %s1507_s12  ;;  %p2573_p2 = scmp.ne.s32.totalorder (!%p2139_p8), %s2560_s25, 0 }
  0x99   : > { %1968 = dma.done.wait (%p2573_p2), %s432_s7, 128  }
  0x9a   : > { %1970 = vsyncadd (%p2573_p2), %s432_s7, 4294967168  ;;  %s440_s0 = sand.u32 1, %s2120_s23   ;;  %s1508_s4 = sshll.u32 %s2312_s16, 4 }
  0x9b   : > { %s441_s27 = scalar_lea.sflag [#allocation6], %s440_s0  ;;  %s444_s8 = scalar_lea.vmem [#allocation5], %s1508_s4 }
  0x9c   : > { %1972 = dma.done.wait (%p2573_p2), %s441_s27, 256  }
  0x9d   : > { %1974 = vsyncadd (%p2573_p2), %s441_s27, 4294967040  ;;  %p2574_p8 = scmp.eq.s32.totalorder %s2120_s23, 0 }
  0x9f   : > { %1976 = dma.done.wait (%p2574_p8), [#allocation6], 256   ;;  %p2575_p12 = pmov %p2574_p8 }
  0xa0   : > { %p2576_p13 = pmov %p2574_p8 }
  0xa1   : > { %1978 = vsyncadd (%p2575_p12), [#allocation6], 4294967040 }
  0xa2   : > { %1980 = dma.done.wait (%p2576_p13), [#allocation9], 256   ;;  %p2577_p0 = pmov %p2574_p8 }
  0xa3   : > { %vm508_vm0 = vcmask 261120   ;;  %v2336_v0 = vld [vmem:[%s435_s15] sm:$0xff]  ;;  %v504_v2 = vld [vmem:[%s444_s8] sm:$0xff]  ;;  %v2019_v22 = vmov 0.0   ;;  %v1774_v23 = vld [vmem:[#allocation7 + $0x8] sm:$0xff]   ;;  %vm2020_vm1 = vmmov 0  }
  0xa4   : > { %1982 = vsyncadd (%p2577_p0), [#allocation9], 4294967040  ;;  %v505_v1 = vld [vmem:[%s444_s8 + $0x8] sm:$0xff]  ;;  %v509_v3 = vsel %vm508_vm0, %v2336_v0, 0.0  ;;  %v538_v5 = vsel %vm508_vm0, %v504_v2, 0.0  ;;  %v1773_v21 = vld [vmem:[#allocation7] sm:$0xff]   ;;  %1571 = vmatprep.subr.bf16.mxu1 %v2019_v22  ;;  %1587 = vmatprep.subr.bf16.mxu0 %v2019_v22 }
  0xa5   : > { %v541_v4 = vsel %vm508_vm0, %v505_v1, 0.0  ;;  %510 = vadd.xlane.f32.xlu0 %v509_v3  ;;  %1572 = vmatpush3.bf16.msra.mxu1 %v1773_v21  ;;  %v1512_v34 = vld [vmem:[%s2542_s9] ss:$0 sm:$0xff]  ;;  %v1776_v47 = vld [vmem:[#allocation8 + $0x8] sm:$0xff]   ;;  %vm719_vm2 = vcmask 64512   ;;  %s2021_s11 = smov 120  }
  0xa6   : > { %542 = vadd.xlane.f32.xlu1 %v541_v4  ;;  %1573 = vmatprep.subr.bf16.mxu1 %v2019_v22  ;;  %v1513_v36 = vld [vmem:[%s2543_s10] ss:$0 sm:$0xff]  ;;  %p499_p1 = scmp.lt.s32.totalorder %s2001_s20, 1  ;;  %vm766_vm3 = vcmask 130048   ;;  %s2022_s4 = smov 96   ;;  %vm831_vm4 = vcmask 1043456  }
  0xa7   : > { %1575 = vmatprep.mubr.msk.bf16.mxu1 %vm2020_vm1, %v2019_v22  ;;  %1589 = vmatprep.mubr.msk.bf16.mxu0 %vm2020_vm1, %v2019_v22  ;;  %v1775_v43 = vld [vmem:[#allocation8] sm:$0xff]   ;;  %s2023_s27 = smov 112   ;;  %s2578_s25 = sld [smem:[#allocation22_spill]] }
  0xa8   : > { %v1518_v55 = vld [vmem:[%s2539_s6] ss:$0 sm:$0xff]  ;;  %s500_s3 = scalar_select %p499_p1, %s2001_s20, 1 }
  0xa9   : > { %539 = vadd.xlane.f32.xlu0 %v538_v5  ;;  %1574 = vmatpush3.bf16.msra.mxu1 %v1774_v23  ;;  %v1514_v63 = vld [vmem:[%s2538_s5] ss:$0 sm:$0xff]  ;;  %s2024_s13 = smov 104   ;;  %s2025_s28 = smov 80  }
  0xaa   : > { %1579 = vmatprep.subr.bf16.mxu1 %v2019_v22  ;;  %s501_s0 = scalar_lea.vmem %s2535_s2, %s500_s3  ;;  %s2026_s24 = smov 88  }
  0xab   : > { %v2392_v4 = vld [vmem:[%s501_s0] ss:$0 sm:$0xff]  ;;  %s2027_s14 = smov 72   ;;  %s1537_s8 = sshll.u32 %s2001_s20, 7 }
  0xac   : > { %s498_s23 = scalar_lea.vmem [#allocation10], %s1507_s12  ;;  %s2580_s29 = sld [smem:[#allocation24_spill]] }
  0xad   : > { %s1350_s20 = scalar_lea.sflag [#allocation4], %s2312_s16  ;;  %p2581_p10 = scmp.ne.s32.totalorder %s2569_s30, 0 }
  0xb2   : > { %s2483_s17 = scalar_lea.hbm %s2580_s29, %s1537_s8 }
 0x132   : > { %v511_v6 = vpop.xlane.xlu0 %510 }
 0x133   : > { %v543_v7 = vpop.xlane.xlu1 %542  ;;  %v513_v8 = vmul.f32 0.03125, %v511_v6 }
 0x134   : > { %v545_v9 = vmul.f32 0.03125, %v543_v7 }
 0x135   : > { %v514_v10 = vsub.f32 %v2336_v0, %v513_v8 }
 0x136   : > { %v547_v11 = vsub.f32 %v505_v1, %v545_v9  ;;  %v540_v12 = vpop.xlane.xlu0 %539 }
 0x137   : > { %v544_v13 = vmul.f32 0.03125, %v540_v12  ;;  %v515_v14 = vmul.f32 %v514_v10, %v514_v10 }
 0x138   : > { %v549_v15 = vmul.f32 %v547_v11, %v547_v11 }
 0x139   : > { %v546_v16 = vsub.f32 %v504_v2, %v544_v13  ;;  %v516_v17 = vsel %vm508_vm0, %v515_v14, 0.0 }
 0x13a   : > { %517 = vadd.xlane.f32.xlu1 %v516_v17  ;;  %v553_v18 = vsel %vm508_vm0, %v549_v15, 0.0 }
 0x13b   : > { %v548_v19 = vmul.f32 %v546_v16, %v546_v16 }
 0x13d   : > { %v550_v20 = vsel %vm508_vm0, %v548_v19, 0.0 }
 0x13e   : > { %554 = vadd.xlane.f32.xlu1 %v553_v18  ;;  %551 = vadd.xlane.f32.xlu0 %v550_v20 }
 0x1c7   : > { %v518_v24 = vpop.xlane.xlu1 %517 }
 0x1c8   : > { %v519_v25 = vmul.f32 0.03125, %v518_v24 }
 0x1ca   : > { %v520_v26 = vadd.f32 1e-05, %v519_v25 }
 0x1cb   : > { %v555_v27 = vpop.xlane.xlu1 %554  ;;  %v552_v28 = vpop.xlane.xlu0 %551 }
 0x1cc   : > { %1777 = vrsqrt.f32 %v520_v26  ;;  %v557_v29 = vmul.f32 0.03125, %v555_v27  ;;  %v556_v30 = vmul.f32 0.03125, %v552_v28  ;;  %v827_v28 = vld [vmem:[%s2578_s25] sm:$0xf] }
 0x1ce   : > { %v559_v31 = vadd.f32 1e-05, %v557_v29  ;;  %v558_v32 = vadd.f32 1e-05, %v556_v30  ;;  %v833_v29 = vsel %vm831_vm4, %v827_v28, 0 }
 0x1d0   : > { %1779 = vrsqrt.f32 %v559_v31 }
 0x1d1   : > { %1781 = vrsqrt.f32 %v558_v32 }
 0x1d6   : > { %v1778_v33 = vpop.eup %1777 }
 0x1d7   : > { %v522_v35 = vmul.f32 %v1778_v33, %v514_v10 }
 0x1d9   : > { %v529_v37 = vmul.f32 %v1512_v34, %v522_v35 }
 0x1da   : > { %v1780_v38 = vpop.eup %1779 }
 0x1db   : > { %v1782_v39 = vpop.eup %1781  ;;  %v563_v40 = vmul.f32 %v1780_v38, %v547_v11  ;;  %v536_v41 = vadd.f32 %v1513_v36, %v529_v37 }
 0x1dc   : > { %v562_v42 = vmul.f32 %v1782_v39, %v546_v16 }
 0x1dd   : > { %v537_v44 = vpack.c.bf16 %v536_v41, %v536_v41  ;;  %v565_v45 = vmul.f32 %v1512_v34, %v563_v40 }
 0x1de   : > { %v564_v46 = vmul.f32 %v1512_v34, %v562_v42 }
 0x1df   : > { %1576 = vmatmul.mubr.msk.bf16.vlgmr.msra.gmra.mrb[0].mxu1 %vm508_vm0, %v537_v44  ;;  %v567_v49 = vadd.f32 %v1513_v36, %v565_v45 }
 0x1e0   : > { %1580 = vmatpush3.bf16.msra.mxu1 %v1775_v43  ;;  %1583 = vmatprep.mubr.msk.bf16.mxu1 %vm2020_vm1, %v2019_v22  ;;  %v566_v48 = vadd.f32 %v1513_v36, %v564_v46 }
 0x1e1   : > { %1581 = vmatprep.subr.bf16.mxu1 %v2019_v22 }
 0x1e2   : > { %v568_v50 = vpack.c.bf16 %v567_v49, %v566_v48 }
 0x1e4   : > { %1582 = vmatpush3.bf16.msra.mxu1 %v1776_v47 }
 0x1e5   : > { %1593 = vmatprep.subr.bf16.mxu1 %v2019_v22 }
 0x1e7   : > { %1584 = vmatmul.mubr.msk.bf16.vlgmr.msra.gmra.mrb[4].mxu1 %vm508_vm0, %v568_v50 }
 0x1e8   : > { %1595 = vmatprep.mubr.msk.bf16.mxu1 %vm2020_vm1, %v2019_v22 }
 0x2b2   : > { %v629_v51 = vpop.f32.mrb[0].mxu1 }
 0x2b3   : > { %v1577_v52 = vpop.f32.mrb[1].mxu1  ;;  %v630_v2 = vadd.f32 %v1514_v63, %v629_v51 }
 0x2b4   : > { %v632_v53 = vpop.f32.mrb[2].mxu1 }
 0x2b5   : > { %v1578_v54 = vpop.f32.mrb[3].mxu1  ;;  %v2381_v3 = vpack.c.bf16 %v630_v2, %v630_v2 }
 0x2ba   : > { %v696_v56 = vpop.f32.mrb[4].mxu1 }
 0x2bb   : > { %v1585_v57 = vpop.f32.mrb[5].mxu1  ;;  %v697_v59 = vadd.f32 %v1518_v55, %v696_v56 }
 0x2bc   : > { %v699_v58 = vpop.f32.mrb[6].mxu1 }
 0x2bd   : > { %v700_v60 = vadd.f32 %v1518_v55, %v699_v58  ;;  %v1586_v61 = vpop.f32.mrb[7].mxu1 }
 0x2bf   : > { %v2371_v62 = vpack.c.bf16 %v700_v60, %v697_v59 }
 0x2c1   : > { %879 = vrot.lane.b32.xlu1 %v2371_v62, %s2021_s11  ;;  %v724_v1 = vsel %vm719_vm2, %v2371_v62, 0 }
 0x2c2   : > { %1588 = vmatpush3.bf16.xpose.msra.mxu0 %v724_v1 }
 0x2c3   : > { %1599 = vmatprep.subr.bf16.mxu0 %v2019_v22 }
 0x2c9   : > { %1590 = vmatmul.mubr.msk.bf16.vlgmr.msra.gmra.mrb[0].mxu0 %vm719_vm2, %v2381_v3 }
 0x2ca   : > { %1601 = vmatprep.mubr.msk.bf16.mxu0 %vm2020_vm1, %v2019_v22  ;;  %1600 = vmatpush3.bf16.msra.mxu0 %v833_v29 }
 0x2cb   : > { %1611 = vmatprep.subr.bf16.mxu0 %v2019_v22 }
 0x333   : > { %v880_v17 = vpop.permute.xlu1 %879 }
 0x334   : > { %v885_v24 = vsel %vm719_vm2, %v880_v17, 0 }
 0x39c   : > { %v760_v5 = vpop.f32.mrb[0].mxu0 }
 0x39d   : > { %v761_v6 = vadd.f32 %v2392_v4, %v760_v5  ;;  %v1591_v7 = vpop.f32.mrb[1].mxu0 }
 0x39e   : > { %v763_v8 = vpop.f32.mrb[2].mxu0 }
 0x39f   : > { %v1592_v9 = vpop.f32.mrb[3].mxu0  ;;  %v767_v10 = vsel %vm766_vm3, %v761_v6, -inf }
 0x3a0   : > { %768 = vmax.xlane.f32.xlu0 %v767_v10 }
 0x3b6   : > { %780 = vrot.lane.b32.xlu0 %v2371_v62, %s2022_s4 }
 0x3ba   : > { %1034 = vrot.lane.b32.xlu0 %v2381_v3, %s2023_s27 }
 0x42d   : > { %v769_v11 = vpop.xlane.xlu0 %768 }
 0x42e   : > { %v770_v12 = vsub.f32 %v761_v6, %v769_v11 }
 0x430   : > { %v771_v13 = vmul.f32 1.442695, %v770_v12 }
 0x431   : > { %v781_v14 = vpop.permute.xlu0 %780 }
 0x432   : > { %1783 = vpow2.f32 %v771_v13  ;;  %1594 = vmatpush3.bf16.msra.mxu1 %v781_v14 }
 0x433   : > { %1605 = vmatprep.subr.bf16.mxu1 %v2019_v22 }
 0x435   : > { %v1035_v27 = vpop.permute.xlu0 %1034 }
 0x43c   : > { %v1784_v15 = vpop.eup %1783 }
 0x43d   : > { %v773_v16 = vsel %vm766_vm3, %v1784_v15, 0.0 }
 0x43e   : > { %774 = vadd.xlane.f32.xlu1 %v773_v16 }
 0x44f   : > { %877 = vrot.lane.b32.xlu1 %v2381_v3, %s2021_s11 }
 0x453   : > { %1036 = vrot.lane.b32.xlu1 %v2371_v62, %s2023_s27  ;;  %s2579_s27 = sld [smem:[#allocation23_spill]] }
 0x4cb   : > { %v775_v18 = vpop.xlane.xlu1 %774 }
 0x4cc   : > { %1785 = vrcp.f32 %v775_v18 }
 0x4cf   : > { %v878_v23 = vpop.permute.xlu1 %877 }
 0x4d3   : > { %v1037_v25 = vpop.permute.xlu1 %1036 }
 0x4d4   : > { %v1042_v26 = vsel %vm719_vm2, %v1037_v25, 0 }
 0x4d6   : > { %v1786_v19 = vpop.eup %1785 }
 0x4d7   : > { %v777_v20 = vmul.f32 %v1786_v19, %v1784_v15  ;;  %v986_v19 = vld [vmem:[%s2578_s25 + $0x4] sm:$0xf] }
 0x4d9   : > { %v778_v21 = vpack.c.bf16 %v777_v20, %v777_v20  ;;  %v991_v20 = vsel %vm831_vm4, %v986_v19, 0 }
 0x4db   : > { %1596 = vmatmul.mubr.msk.bf16.vlgmr.msra.gmra.mrb[8].mxu1 %vm766_vm3, %v778_v21 }
 0x4dc   : > { %1606 = vmatpush3.bf16.xpose.msra.mxu1 %v885_v24  ;;  %1607 = vmatprep.mubr.msk.bf16.mxu1 %vm2020_vm1, %v2019_v22 }
 0x4dd   : > { %1623 = vmatprep.subr.bf16.mxu1 %v2019_v22 }
 0x4e3   : > { %1608 = vmatmul.mubr.msk.bf16.vlgmr.msra.gmra.mrb[12].mxu1 %vm719_vm2, %v878_v23 }
 0x4e4   : > { %1624 = vmatpush3.bf16.xpose.msra.mxu1 %v1042_v26  ;;  %1625 = vmatprep.mubr.msk.bf16.mxu1 %vm2020_vm1, %v2019_v22  ;;  %v1143_v26 = vld [vmem:[%s2578_s25 + $0x8] sm:$0xf] }
 0x4e5   : > { %1629 = vmatprep.subr.bf16.mxu1 %v2019_v22 }
 0x4eb   : > { %1626 = vmatmul.mubr.msk.bf16.vlgmr.msra.gmra.mrb[16].mxu1 %vm719_vm2, %v1035_v27 }
 0x4ec   : > { %1631 = vmatprep.mubr.msk.bf16.mxu1 %vm2020_vm1, %v2019_v22 }
 0x5ae   : > { %v820_v30 = vpop.f32.mrb[8].mxu1 }
 0x5af   : > { %v826_v31 = vpack.c.bf16 %v820_v30, %v820_v30  ;;  %v1597_v32 = vpop.f32.mrb[9].mxu1  ;;  %v1148_v30 = vsel %vm831_vm4, %v1143_v26, 0 }
 0x5b0   : > { %v823_v33 = vpop.f32.mrb[10].mxu1 }
 0x5b1   : > { %v1598_v34 = vpop.f32.mrb[11].mxu1  ;;  %1602 = vmatmul.mubr.msk.bf16.vlgmr.msra.gmra.mrb[4].mxu0 %vm719_vm2, %v826_v31 }
 0x5b2   : > { %1613 = vmatprep.mubr.msk.bf16.mxu0 %vm2020_vm1, %v2019_v22 }
 0x5b6   : > { %v921_v35 = vpop.f32.mrb[12].mxu1 }
 0x5b7   : > { %v1609_v36 = vpop.f32.mrb[13].mxu1  ;;  %v922_v50 = vadd.f32 %v2392_v4, %v921_v35 }
 0x5b8   : > { %v924_v37 = vpop.f32.mrb[14].mxu1  ;;  %v1300_v36 = vld [vmem:[%s2578_s25 + $0xc] sm:$0xf] }
 0x5b9   : > { %v1610_v38 = vpop.f32.mrb[15].mxu1  ;;  %v927_v51 = vsel %vm766_vm3, %v922_v50, -inf }
 0x5be   : > { %v1078_v39 = vpop.f32.mrb[16].mxu1 }
 0x5bf   : > { %v1079_v40 = vadd.f32 %v2392_v4, %v1078_v39  ;;  %v1627_v41 = vpop.f32.mrb[17].mxu1  ;;  %v1305_v39 = vsel %vm831_vm4, %v1300_v36, 0 }
 0x5c0   : > { %v1081_v42 = vpop.f32.mrb[18].mxu1 }
 0x5c1   : > { %v1628_v43 = vpop.f32.mrb[19].mxu1  ;;  %v1084_v44 = vsel %vm766_vm3, %v1079_v40, -inf }
 0x5c2   : > { %1085 = vmax.xlane.f32.xlu1 %v1084_v44 }
 0x5d3   : > { %1193 = vrot.lane.b32.xlu1 %v2371_v62, %s2024_s13 }
 0x5d7   : > { %1191 = vrot.lane.b32.xlu1 %v2381_v3, %s2024_s13  ;;  %s1364_s13 = sshll.u32 %s498_s23, 4  ;;  %s2485_s13 = int_to_ptr.vmem [resolvable:$true] %s1364_s13 }
 0x5d8   : > { %s1915_s12 = scalar_lea.vmem %s2485_s13, 128 }
 0x5d9   : > { %p1916_p6 = scmp.ne.s32.totalorder %s2485_s13, %s1915_s12 }
 0x5db   : > { %p1917_p3 = pnand %p1916_p6, %p2581_p10 }
 0x5dd   : > { %p1918_p4 = pneg %p1917_p3 }
 0x64f   : > { %v1086_v45 = vpop.xlane.xlu1 %1085 }
 0x650   : > { %v1087_v46 = vsub.f32 %v1079_v40, %v1086_v45  ;;  %v1522_v45 = vld [vmem:[%s2579_s27] ss:$0 sm:$0xff] }
 0x652   : > { %v1088_v47 = vmul.f32 1.442695, %v1087_v46  ;;  %v712_v46 = vadd.f32 %v1522_v45, %v2336_v0 }
 0x653   : > { %v1194_v56 = vpop.permute.xlu1 %1193 }
 0x654   : > { %1787 = vpow2.f32 %v1088_v47  ;;  %v1199_v58 = vsel %vm719_vm2, %v1194_v56, 0 }
 0x657   : > { %v1192_v59 = vpop.permute.xlu1 %1191 }
 0x65e   : > { %v1788_v48 = vpop.eup %1787 }
 0x65f   : > { %v1090_v49 = vsel %vm766_vm3, %v1788_v48, 0.0 }
 0x660   : > { %1091 = vadd.xlane.f32.xlu0 %v1090_v49 }
 0x676   : > { %1096 = vrot.lane.b32.xlu0 %v2371_v62, %s2025_s28 }
 0x695   : > { %928 = vmax.xlane.f32.xlu0 %v927_v51 }
 0x6ab   : > { %939 = vrot.lane.b32.xlu0 %v2371_v62, %s2026_s24 }
 0x6ed   : > { %v1092_v52 = vpop.xlane.xlu0 %1091 }
 0x6ee   : > { %1789 = vrcp.f32 %v1092_v52 }
 0x6f1   : > { %v1097_v53 = vpop.permute.xlu0 %1096 }
 0x6f2   : > { %1630 = vmatpush3.bf16.msra.mxu1 %v1097_v53 }
 0x6f3   : > { %1641 = vmatprep.subr.bf16.mxu1 %v2019_v22 }
 0x6f8   : > { %v1790_v54 = vpop.eup %1789 }
 0x6f9   : > { %v1094_v55 = vmul.f32 %v1790_v54, %v1788_v48 }
 0x6fb   : > { %v1095_v57 = vpack.c.bf16 %v1094_v55, %v1094_v55 }
 0x6fd   : > { %1632 = vmatmul.mubr.msk.bf16.vlgmr.msra.gmra.mrb[20].mxu1 %vm766_vm3, %v1095_v57 }
 0x6fe   : > { %1642 = vmatpush3.bf16.xpose.msra.mxu1 %v1199_v58  ;;  %1643 = vmatprep.mubr.msk.bf16.mxu1 %vm2020_vm1, %v2019_v22 }
 0x705   : > { %1644 = vmatmul.mubr.msk.bf16.vlgmr.msra.gmra.mrb[24].mxu1 %vm719_vm2, %v1192_v59 }
 0x722   : > { %v929_v60 = vpop.xlane.xlu0 %928 }
 0x723   : > { %v930_v61 = vsub.f32 %v922_v50, %v929_v60 }
 0x725   : > { %v931_v63 = vmul.f32 1.442695, %v930_v61 }
 0x726   : > { %v940_v1 = vpop.permute.xlu0 %939 }
 0x727   : > { %1791 = vpow2.f32 %v931_v63  ;;  %1612 = vmatpush3.bf16.msra.mxu0 %v940_v1 }
 0x728   : > { %1617 = vmatprep.subr.bf16.mxu0 %v2019_v22 }
 0x731   : > { %v1792_v2 = vpop.eup %1791 }
 0x732   : > { %v933_v3 = vsel %vm766_vm3, %v1792_v2, 0.0 }
 0x733   : > { %934 = vadd.xlane.f32.xlu1 %v933_v3 }
 0x7c0   : > { %v935_v5 = vpop.xlane.xlu1 %934 }
 0x7c1   : > { %1793 = vrcp.f32 %v935_v5 }
 0x7cb   : > { %v1794_v6 = vpop.eup %1793 }
 0x7cc   : > { %v937_v7 = vmul.f32 %v1794_v6, %v1792_v2 }
 0x7ce   : > { %v938_v8 = vpack.c.bf16 %v937_v7, %v937_v7 }
 0x7d0   : > { %1614 = vmatmul.mubr.msk.bf16.vlgmr.msra.gmra.mrb[8].mxu0 %vm766_vm3, %v938_v8  ;;  %v1136_v9 = vpop.f32.mrb[20].mxu1 }
 0x7d1   : > { %v1633_v10 = vpop.f32.mrb[21].mxu1  ;;  %1619 = vmatprep.mubr.msk.bf16.mxu0 %vm2020_vm1, %v2019_v22  ;;  %1618 = vmatpush3.bf16.msra.mxu0 %v991_v20 }
 0x7d2   : > { %v1139_v11 = vpop.f32.mrb[22].mxu1  ;;  %1635 = vmatprep.subr.bf16.mxu0 %v2019_v22 }
 0x7d3   : > { %v1634_v12 = vpop.f32.mrb[23].mxu1 }
 0x7d8   : > { %v1235_v13 = vpop.f32.mrb[24].mxu1 }
 0x7d9   : > { %v1236_v14 = vadd.f32 %v2392_v4, %v1235_v13  ;;  %v1645_v15 = vpop.f32.mrb[25].mxu1 }
 0x7da   : > { %v1238_v16 = vpop.f32.mrb[26].mxu1 }
 0x7db   : > { %v1646_v17 = vpop.f32.mrb[27].mxu1  ;;  %v1241_v18 = vsel %vm766_vm3, %v1236_v14, -inf }
 0x7dc   : > { %1242 = vmax.xlane.f32.xlu1 %v1241_v18 }
 0x869   : > { %v1243_v21 = vpop.xlane.xlu1 %1242 }
 0x86a   : > { %v1244_v23 = vsub.f32 %v1236_v14, %v1243_v21 }
 0x86c   : > { %v1245_v24 = vmul.f32 1.442695, %v1244_v23 }
 0x86e   : > { %1795 = vpow2.f32 %v1245_v24 }
 0x878   : > { %v1796_v4 = vpop.eup %1795 }
 0x879   : > { %v1247_v25 = vsel %vm766_vm3, %v1796_v4, 0.0 }
 0x87a   : > { %1248 = vadd.xlane.f32.xlu1 %v1247_v25 }
 0x88b   : > { %1253 = vrot.lane.b32.xlu1 %v2371_v62, %s2027_s14  ;;  %v1142_v62 = vpack.c.bf16 %v1136_v9, %v1136_v9  ;;  %s2028_s14 = smov [#allocation10]  }
 0x88c   : > { %s1919_s11 = sshll.u32 %s2028_s14, 4  ;;  %s1920_s11 = int_to_ptr.vmem [resolvable:$false] %s1919_s11 }
 0x88d   : > { %s1921_s3 = scalar_lea.vmem %s1920_s11, 256  ;;  %p1922_p9 = scmp.lt.s32.totalorder %s2485_s13, %s1920_s11 }
 0x88e   : > { %p1923_p5 = scmp.lt.s32.totalorder %s1921_s3, %s1915_s12 }
 0x890   : > { %p1924_p7 = por %p1923_p5, %p1922_p9 }
 0x892   : > { %p1925_p11 = pnand %p1924_p7, %p1918_p4 }
 0x8a3   : > { %v979_v27 = vpop.f32.mrb[8].mxu0 }
 0x8a4   : > { %v985_v28 = vpack.c.bf16 %v979_v27, %v979_v27  ;;  %v1615_v29 = vpop.f32.mrb[9].mxu0 }
 0x8a5   : > { %v982_v31 = vpop.f32.mrb[10].mxu0 }
 0x8a6   : > { %v1616_v32 = vpop.f32.mrb[11].mxu0  ;;  %1620 = vmatmul.mubr.msk.bf16.vlgmr.msra.gmra.mrb[4].mxu0 %vm719_vm2, %v985_v28 }
 0x8a7   : > { %1636 = vmatpush3.bf16.msra.mxu0 %v1148_v30  ;;  %1637 = vmatprep.mubr.msk.bf16.mxu0 %vm2020_vm1, %v2019_v22 }
 0x8a8   : > { %1647 = vmatprep.subr.bf16.mxu0 %v2019_v22 }
 0x8b2   : > { %1638 = vmatmul.mubr.msk.bf16.vlgmr.msra.gmra.mrb[4].mxu0 %vm719_vm2, %v1142_v62 }
 0x8b3   : > { %1649 = vmatprep.mubr.msk.bf16.mxu0 %vm2020_vm1, %v2019_v22 }
 0x907   : > { %v1249_v33 = vpop.xlane.xlu1 %1248 }
 0x908   : > { %1797 = vrcp.f32 %v1249_v33 }
 0x90b   : > { %v1254_v34 = vpop.permute.xlu1 %1253 }
 0x90c   : > { %1648 = vmatpush3.bf16.msra.mxu0 %v1254_v34 }
 0x90d   : > { %1653 = vmatprep.subr.bf16.mxu0 %v2019_v22 }
 0x912   : > { %v1798_v35 = vpop.eup %1797 }
 0x913   : > { %v1251_v37 = vmul.f32 %v1798_v35, %v1796_v4 }
 0x915   : > { %v1252_v38 = vpack.c.bf16 %v1251_v37, %v1251_v37 }
 0x917   : > { %1650 = vmatmul.mubr.msk.bf16.vlgmr.msra.gmra.mrb[12].mxu0 %vm766_vm3, %v1252_v38 }
 0x918   : > { %1654 = vmatpush3.bf16.msra.mxu0 %v1305_v39  ;;  %1655 = vmatprep.mubr.msk.bf16.mxu0 %vm2020_vm1, %v2019_v22 }
 0x9ea   : > { %v1293_v40 = vpop.f32.mrb[12].mxu0 }
 0x9eb   : > { %v1299_v41 = vpack.c.bf16 %v1293_v40, %v1293_v40  ;;  %v1651_v42 = vpop.f32.mrb[13].mxu0 }
 0x9ec   : > { %v1296_v43 = vpop.f32.mrb[14].mxu0 }
 0x9ed   : > { %v1652_v44 = vpop.f32.mrb[15].mxu0  ;;  %1656 = vmatmul.mubr.msk.bf16.vlgmr.msra.gmra.mrb[4].mxu0 %vm719_vm2, %v1299_v41 }
 0xac0   : > { %v1341_v22 = vpop.f32.mrb[4].mxu0 }
 0xac1   : > { %v1659_v47 = vadd.f32 %v1341_v22, %v712_v46  ;;  %v1657_v48 = vpop.f32.mrb[5].mxu0 }
 0xac2   : > { %v1344_v49 = vpop.f32.mrb[6].mxu0 }
 0xac3   : > { %v1658_v50 = vpop.f32.mrb[7].mxu0  ;;  %1348 = vst.msk [vmem:[%s498_s23] sm:$0xff] %vm508_vm0, %v1659_v47 }
 0xac4   : > { %1928 = shalt.err (!%p1925_p11)
}
 0xac5   : > { %s1929_s16 = scalar_lea.hbm %s2483_s17, 128  ;;  %s1933_s0 = scalar_lea.hbm %s2580_s29, 256 }
 0xac6   : > { %p1930_p2 = scmp.ne.s32.totalorder %s2483_s17, %s1929_s16  ;;  %p1934_p13 = scmp.lt.u32.totalorder %s2483_s17, %s2580_s29 }
 0xac7   : > { %p1935_p0 = scmp.lt.u32.totalorder %s1933_s0, %s1929_s16  ;;  %p1937_p6 = scmp.lt.u32.totalorder %s1929_s16, %s2483_s17 }
 0xac8   : > { %p1931_p8 = pnand %p1930_p2, %p2581_p10 }
 0xac9   : > { %p1936_p1 = por %p1935_p0, %p1934_p13 }
 0xaca   : > { %p1932_p12 = pneg %p1931_p8 }
 0xacb   : > { %p1938_p3 = por %p1937_p6, %p1936_p1 }
 0xacd   : > { %p1939_p4 = pnand %p1938_p3, %p1932_p12 }
 0xacf   : > { %1942 = shalt.err (!%p1939_p4)
}
 0xad0   : > { %1684 = dma.vmem_to_hbm [thread:$0]  (%p2581_p10), %s2485_s13, 128, %s2483_s17, %s1350_s20  }
 0xad1 PF: > { %s2582_s8 = sld [smem:[#allocation16_spill]]  ;;  %s2583_s23 = sld [smem:[#allocation17_spill]] }
 0xad2   : > { %p2585_p5 = scmp.ge.s32.totalorder %s2009_s22, 2 }
 0xad7   : > { %s1376_s28 = sand.u32 1, %s2582_s8   ;;  %p2584_p9 = scmp.ne.s32.totalorder %s2583_s23, 0 }
 0xad8   : > { %s1377_s24 = scalar_lea.sflag [#allocation4], %s1376_s28 }
 0xad9   : > { %p1701_p7 = pnand %p2585_p5, %p2584_p9 }
 0xadb   : > { %1984 = dma.done.wait (!%p1701_p7), %s1377_s24, 128  }
 0xadc   : > { %1986 = vsyncadd (!%p1701_p7), %s1377_s24, 4294967168  ;;  %s31_s22 = sadd.s32 1, %s2009_s22   ;;  %s2586_s30 = sld [smem:[#allocation18_spill]] }
 0xadd   : > { %p28_p11 = scmp.ge.s32.totalorder %s31_s22, 4   ;;  %s2587_s17 = smov %s1993_s18 }
 0xade   : > { %s2588_s18 = smov %s1997_s19  ;;  %s2589_s19 = smov %s2230_s26 }
 0xadf   : > { %s2590_s20 = smov %s2005_s21  ;;  %30 = sbr.rel (!%p28_p11) target bundleno = 16 (0x10), region = 133 }
 0xae2   : > { %s2591_s21 = smov %s2586_s30 }
 0xae6   :  { %1382 = vsyncpa [#allocation3], 1 }
 0xae7   :  { %1384 = vsyncpa [#allocation3 + $0x1], 1 }
 0xae8   :  { %1385 = vsyncpa [#allocation6], 1 }
 0xae9   :  { %1387 = vsyncpa [#allocation6 + $0x1], 1 }
 0xaea   :  { %1388 = vsyncpa [#allocation9], 1 }
 0xaeb   :  { %1389 = vsyncpa [#allocation4], 1 }
 0xaec   :  { %1391 = vsyncpa [#allocation4 + $0x1], 1 }

</bundles_post_ra>
